<compile_context>
chip_gen: v7x
topology: tpu7x:2x2x1
jax: 0.10.0
libtpu: 0.0.40
codegen_flags: <defaults>
</compile_context>

<pallas_src>
import functools

import jax
import jax.numpy as jnp
from jax.experimental import pallas as pl
from jax.experimental.pallas import tpu as pltpu

IN_FEATURES = 512
N_CLASS = 2
TEMP_SCALE = 10.0
# Gumbel-softmax temperature (0.8) does not affect the *forward* value of the
# straight-through sample (argmax is temperature invariant), so it is not needed.


def _median_pool5_binary(m):
    """MedianPool1d(kernel=5, stride=1, 'same' reflect) for a binary (..., T) signal.

    Median of 5 values in {0,1} == majority vote: window sum >= 3.  Reflect
    padding is built with static lane slices + concatenate (O(T), no gather
    matrices, no matmuls).
    """
    T = m.shape[-1]
    left = jnp.concatenate([m[..., 2:3], m[..., 1:2]], axis=-1)            # [m2, m1]
    right = jnp.concatenate([m[..., T - 2:T - 1], m[..., T - 3:T - 2]], axis=-1)
    p = jnp.concatenate([left, m, right], axis=-1)                         # (..., T+4)
    s = (p[..., 0:T] + p[..., 1:T + 1] + p[..., 2:T + 2]
         + p[..., 3:T + 3] + p[..., 4:T + 4])                              # (..., T)
    return (s > 2.5).astype(m.dtype)


def _mask_generator_kernel(x_ref, gd_ref, w_ref, b_ref, post_ref, mask_ref, *,
                           temp_scale):
    # x_ref:   (bb, D, T) bf16      gd_ref:  (bb, 1, T) f32  (g1 - g0)
    # w_ref:   (2, D) bf16          b_ref:   (2, 1) f32
    # post_ref:(bb, 2, T) f32       mask_ref:(bb, 1, T) f32
    bb = x_ref.shape[0]
    x = x_ref[...]                                       # (bb, D, T) bf16
    w = w_ref[...]                                       # (2, D)     bf16
    b = b_ref[...]                                       # (2, 1)     f32
    inv_temp = jnp.float32(1.0 / temp_scale)

    # ---- Linear(512 -> 2): batched MXU matmul, lane axis = T, f32 accumulate --
    wb = jnp.broadcast_to(w, (bb,) + w.shape)            # (bb, 2, D)
    logits = jnp.einsum("bcd,bdt->bct", wb, x,
                        preferred_element_type=jnp.float32)   # (bb, 2, T)
    scaled = (logits + b[None, :, :]) * inv_temp              # (bb, 2, T)

    s0 = scaled[:, 0:1, :]                                    # (bb, 1, T)
    s1 = scaled[:, 1:2, :]                                    # (bb, 1, T)

    # ---- temperature softmax (2-class), lane-dense -----------------------------
    mmax = jnp.maximum(s0, s1)                                # (bb, 1, T)
    e = jnp.exp(scaled - mmax)                                # (bb, 2, T)
    denom = e[:, 0:1, :] + e[:, 1:2, :]                       # (bb, 1, T)
    post_ref[...] = (e * pl.reciprocal(denom, approx=True)).astype(post_ref.dtype)

    # ---- straight-through Gumbel argmax ----------------------------------------
    # class 1 selected  <=>  log(p1)+g1 > log(p0)+g0  <=>  (s1-s0)+(g1-g0) > 0
    d = (s1 - s0) + gd_ref[...]                               # (bb, 1, T)
    m = (d > 0.0).astype(jnp.float32)                         # binary (bb, 1, T)

    # ---- 3x MedianPool1d(5, same, reflect) == 3x binary majority vote ----------
    m = _median_pool5_binary(m)
    m = _median_pool5_binary(m)
    m = _median_pool5_binary(m)
    mask_ref[...] = m.astype(mask_ref.dtype)


def _choose_block_b(B, T, D, target_bytes=2 << 20, max_block=128):
    """Batch-tile size: ~2 MiB of x per grid step (amortizes ~0.35us/step grid
    overhead for small T) while staying far under VMEM and keeping >= 2 grid
    steps for v7x's two TensorCores."""
    per_batch = T * D * 2                       # bf16 bytes per batch item
    bb = max(1, min(B, max_block, target_bytes // max(per_batch, 1)))
    while bb > 1 and (B // bb) < 2:             # leave work for both v7x cores
        bb -= 1
    while B % bb:                               # keep index_map simple (no remainder)
        bb -= 1
    return bb


def mask_generator_forward(x_ncl, weight, bias, gumbel_noise,
                           temp_scale=TEMP_SCALE, block_b=None):
    """x_ncl: (B, 512, T) (PyTorch NCL).  weight: (2, 512), bias: (2,),
    gumbel_noise: (B, T, 2).  Returns (posterior (B, T, 2), mask (B, 1, T))."""
    B, D, T = x_ncl.shape
    assert D == IN_FEATURES
    assert T >= 3, "reflect padding of MedianPool1d(5) needs T >= 3"

    # glue: dtype / parameter plumbing (no transpose of the big activation tensor)
    x = x_ncl.astype(jnp.bfloat16)                              # (B, D, T)
    w = weight.astype(jnp.bfloat16)                             # (2, D)
    b2 = bias.reshape(N_CLASS, 1).astype(jnp.float32)           # (2, 1)
    g = gumbel_noise.astype(jnp.float32)                        # (B, T, 2)
    gdiff = (g[..., 1] - g[..., 0])[:, None, :]                 # (B, 1, T)

    if block_b is None:
        block_b = _choose_block_b(B, T, D)
    grid = (B // block_b,)

    kernel = functools.partial(_mask_generator_kernel, temp_scale=temp_scale)

    post_ct, mask = pl.pallas_call(
        kernel,
        out_shape=(
            jax.ShapeDtypeStruct((B, N_CLASS, T), jnp.float32),
            jax.ShapeDtypeStruct((B, 1, T), jnp.float32),
        ),
        grid_spec=pltpu.PrefetchScalarGridSpec(
            num_scalar_prefetch=0,
            grid=grid,
            in_specs=[
                pl.BlockSpec((block_b, D, T), lambda i: (i, 0, 0)),
                pl.BlockSpec((block_b, 1, T), lambda i: (i, 0, 0)),
                pl.BlockSpec((N_CLASS, D), lambda i: (0, 0)),
                pl.BlockSpec((N_CLASS, 1), lambda i: (0, 0)),
            ],
            out_specs=[
                pl.BlockSpec((block_b, N_CLASS, T), lambda i: (i, 0, 0)),
                pl.BlockSpec((block_b, 1, T), lambda i: (i, 0, 0)),
            ],
        ),
        compiler_params=pltpu.CompilerParams(
            dimension_semantics=("parallel",),
            vmem_limit_bytes=32 * 1024 * 1024,
        ),
    )(x, gdiff, w, b2)

    posterior = jnp.transpose(post_ct, (0, 2, 1))               # (B, T, 2) tiny
    return posterior, mask


if __name__ == "__main__":
    key = jax.random.PRNGKey(0)
    kx, kw, kb, kg = jax.random.split(key, 4)

    B, D, T = 2, IN_FEATURES, 8
    x = jax.random.normal(kx, (B, D, T), dtype=jnp.float32)

    # deterministic synthetic Linear(512, 2) parameters (nn.Linear-style init)
    bound = 1.0 / (D ** 0.5)
    weight = jax.random.uniform(kw, (N_CLASS, D), minval=-bound, maxval=bound,
                                dtype=jnp.float32)
    bias = jax.random.uniform(kb, (N_CLASS,), minval=-bound, maxval=bound,
                              dtype=jnp.float32)

    # gumbel noise (torch: -log(-log(U + eps) + eps)); RNG done in JAX glue
    # TODO(synk): the PyTorch module draws this noise internally with torch.rand;
    # it is passed in here so the kernel stays deterministic / testable.
    eps = 1e-20
    u = jax.random.uniform(kg, (B, T, N_CLASS), dtype=jnp.float32)
    g = -jnp.log(-jnp.log(u + eps) + eps)

    posterior, mask = jax.block_until_ready(
        mask_generator_forward(x, weight, bias, g))

    # ---- reference checks (plain JAX) ----
    assert posterior.shape == (B, T, N_CLASS)
    assert mask.shape == (B, 1, T)

    x_t = jnp.transpose(x, (0, 2, 1))
    ref_logits = jnp.einsum("btd,cd->btc", x_t, weight) + bias
    ref_post = jax.nn.softmax(ref_logits / TEMP_SCALE, axis=-1)
    assert jnp.allclose(posterior, ref_post, atol=5e-3, rtol=1e-3)

    # mask reference computed from the kernel posterior + same gumbel noise
    z = jnp.log(posterior) + g
    hard1 = (z[..., 1] > z[..., 0]).astype(jnp.float32)[:, None, :]  # (B, 1, T)

    def median_pool_ref(m):
        p = jnp.pad(m, ((0, 0), (0, 0), (2, 2)), mode="reflect")
        wins = jnp.stack([p[:, :, i:i + m.shape[-1]] for i in range(5)], axis=-1)
        return jnp.sort(wins, axis=-1)[..., 2]

    ref_mask = median_pool_ref(median_pool_ref(median_pool_ref(hard1)))
    assert jnp.array_equal(mask, ref_mask)

    print("KERNEL_OK")
</pallas_src>

<mosaic_0001>
module attributes {stable_mosaic.version = 11 : i64} {
  func.func @_mask_generator_kernel(%arg0: i32, %arg1: memref<1x512x8xbf16, #tpu.memory_space<vmem>>, %arg2: memref<1x1x8xf32, #tpu.memory_space<vmem>>, %arg3: memref<2x512xbf16, #tpu.memory_space<vmem>>, %arg4: memref<2x1xf32, #tpu.memory_space<vmem>>, %arg5: memref<1x2x8xf32, #tpu.memory_space<vmem>>, %arg6: memref<1x1x8xf32, #tpu.memory_space<vmem>>) attributes {dimension_semantics = [#tpu.dimension_semantics<parallel>], iteration_bounds = array<i64: 2>, scalar_prefetch = 0 : i64, scratch_operands = 0 : i64, tpu.core_type = #tpu.core_type<tc>, window_params = [{transform_indices = @transform_0, window_bounds = array<i64: 1, 512, 8>}, {transform_indices = @transform_1, window_bounds = array<i64: 1, 1, 8>}, {pipeline_mode = #tpu.pipeline_mode<synchronous>, transform_indices = @transform_2, window_bounds = array<i64: 2, 512>}, {pipeline_mode = #tpu.pipeline_mode<synchronous>, transform_indices = @transform_3, window_bounds = array<i64: 2, 1>}, {transform_indices = @transform_4, window_bounds = array<i64: 1, 2, 8>}, {transform_indices = @transform_5, window_bounds = array<i64: 1, 1, 8>}]} {
    %c0 = arith.constant 0 : index
    %c0_0 = arith.constant 0 : index
    %c0_1 = arith.constant 0 : index
    %0 = vector.load %arg1[%c0, %c0_0, %c0_1] : memref<1x512x8xbf16, #tpu.memory_space<vmem>>, vector<1x512x8xbf16>
    %c0_2 = arith.constant 0 : index
    %c0_3 = arith.constant 0 : index
    %1 = vector.load %arg3[%c0_2, %c0_3] : memref<2x512xbf16, #tpu.memory_space<vmem>>, vector<2x512xbf16>
    %c0_4 = arith.constant 0 : index
    %c0_5 = arith.constant 0 : index
    %2 = vector.load %arg4[%c0_4, %c0_5] : memref<2x1xf32, #tpu.memory_space<vmem>>, vector<2x1xf32>
    %3 = vector.shape_cast %1 : vector<2x512xbf16> to vector<1x2x512xbf16>
    "tpu.trace_start"() <{level = 10 : i32, message = "bcd,bdt->bct"}> : () -> ()
    %cst = arith.constant dense<0.000000e+00> : vector<1x2x8xf32>
    %4 = tpu.matmul %3, %0, %cst {dimension_numbers = #tpu.dot_dimension_numbers<[2], [1], [1], [2], [0, 0, 0, 1, 1, 2], [0], [0]>} : vector<1x2x512xbf16>, vector<1x512x8xbf16>, vector<1x2x8xf32> -> vector<1x2x8xf32>
    "tpu.trace_stop"() : () -> ()
    %5 = vector.shape_cast %2 : vector<2x1xf32> to vector<1x2x1xf32>
    %6 = vector.broadcast %5 : vector<1x2x1xf32> to vector<1x2x8xf32>
    %7 = arith.addf %4, %6 : vector<1x2x8xf32>
    %cst_6 = arith.constant 1.000000e-01 : f32
    %8 = vector.broadcast %cst_6 : f32 to vector<1x2x8xf32>
    %9 = arith.mulf %7, %8 : vector<1x2x8xf32>
    %10 = vector.extract_strided_slice %9 {offsets = [0, 0, 0], sizes = [1, 1, 8], strides = [1, 1, 1]} : vector<1x2x8xf32> to vector<1x1x8xf32>
    %11 = vector.extract_strided_slice %9 {offsets = [0, 1, 0], sizes = [1, 1, 8], strides = [1, 1, 1]} : vector<1x2x8xf32> to vector<1x1x8xf32>
    %12 = arith.maximumf %10, %11 : vector<1x1x8xf32>
    %13 = vector.broadcast %12 : vector<1x1x8xf32> to vector<1x2x8xf32>
    %14 = arith.subf %9, %13 : vector<1x2x8xf32>
    %15 = math.exp %14 : vector<1x2x8xf32>
    %16 = vector.extract_strided_slice %15 {offsets = [0, 0, 0], sizes = [1, 1, 8], strides = [1, 1, 1]} : vector<1x2x8xf32> to vector<1x1x8xf32>
    %17 = vector.extract_strided_slice %15 {offsets = [0, 1, 0], sizes = [1, 1, 8], strides = [1, 1, 1]} : vector<1x2x8xf32> to vector<1x1x8xf32>
    %18 = arith.addf %16, %17 : vector<1x1x8xf32>
    %19 = tpu.reciprocal %18 {approx = true} : vector<1x1x8xf32> -> vector<1x1x8xf32>
    %20 = vector.broadcast %19 : vector<1x1x8xf32> to vector<1x2x8xf32>
    %21 = arith.mulf %15, %20 : vector<1x2x8xf32>
    %c0_7 = arith.constant 0 : index
    %c0_8 = arith.constant 0 : index
    %c0_9 = arith.constant 0 : index
    %22 = vector.load %arg5[%c0_7, %c0_8, %c0_9] : memref<1x2x8xf32, #tpu.memory_space<vmem>>, vector<1x2x8xf32>
    tpu.vector_store %arg5[%c0_7, %c0_8, %c0_9], %21 {strides = array<i32>} : memref<1x2x8xf32, #tpu.memory_space<vmem>>, vector<1x2x8xf32>,
    %23 = arith.subf %11, %10 : vector<1x1x8xf32>
    %c0_10 = arith.constant 0 : index
    %c0_11 = arith.constant 0 : index
    %c0_12 = arith.constant 0 : index
    %24 = vector.load %arg2[%c0_10, %c0_11, %c0_12] : memref<1x1x8xf32, #tpu.memory_space<vmem>>, vector<1x1x8xf32>
    %25 = arith.addf %23, %24 : vector<1x1x8xf32>
    %cst_13 = arith.constant 0.000000e+00 : f32
    %26 = vector.broadcast %cst_13 : f32 to vector<1x1x8xf32>
    %27 = arith.cmpf ogt, %25, %26 : vector<1x1x8xf32>
    %28 = arith.extui %27 : vector<1x1x8xi1> to vector<1x1x8xi32>
    %29 = arith.sitofp %28 : vector<1x1x8xi32> to vector<1x1x8xf32>
    %30 = vector.extract_strided_slice %29 {offsets = [0, 0, 2], sizes = [1, 1, 1], strides = [1, 1, 1]} : vector<1x1x8xf32> to vector<1x1x1xf32>
    %31 = vector.extract_strided_slice %29 {offsets = [0, 0, 1], sizes = [1, 1, 1], strides = [1, 1, 1]} : vector<1x1x8xf32> to vector<1x1x1xf32>
    %32 = tpu.concatenate %30, %31 in 2 : vector<1x1x1xf32>, vector<1x1x1xf32> -> vector<1x1x2xf32>
    %33 = vector.extract_strided_slice %29 {offsets = [0, 0, 6], sizes = [1, 1, 1], strides = [1, 1, 1]} : vector<1x1x8xf32> to vector<1x1x1xf32>
    %34 = vector.extract_strided_slice %29 {offsets = [0, 0, 5], sizes = [1, 1, 1], strides = [1, 1, 1]} : vector<1x1x8xf32> to vector<1x1x1xf32>
    %35 = tpu.concatenate %33, %34 in 2 : vector<1x1x1xf32>, vector<1x1x1xf32> -> vector<1x1x2xf32>
    %36 = tpu.concatenate %32, %29, %35 in 2 : vector<1x1x2xf32>, vector<1x1x8xf32>, vector<1x1x2xf32> -> vector<1x1x12xf32>
    %37 = vector.extract_strided_slice %36 {offsets = [0, 0, 0], sizes = [1, 1, 8], strides = [1, 1, 1]} : vector<1x1x12xf32> to vector<1x1x8xf32>
    %38 = vector.extract_strided_slice %36 {offsets = [0, 0, 1], sizes = [1, 1, 8], strides = [1, 1, 1]} : vector<1x1x12xf32> to vector<1x1x8xf32>
    %39 = arith.addf %37, %38 : vector<1x1x8xf32>
    %40 = vector.extract_strided_slice %36 {offsets = [0, 0, 2], sizes = [1, 1, 8], strides = [1, 1, 1]} : vector<1x1x12xf32> to vector<1x1x8xf32>
    %41 = arith.addf %39, %40 : vector<1x1x8xf32>
    %42 = vector.extract_strided_slice %36 {offsets = [0, 0, 3], sizes = [1, 1, 8], strides = [1, 1, 1]} : vector<1x1x12xf32> to vector<1x1x8xf32>
    %43 = arith.addf %41, %42 : vector<1x1x8xf32>
    %44 = vector.extract_strided_slice %36 {offsets = [0, 0, 4], sizes = [1, 1, 8], strides = [1, 1, 1]} : vector<1x1x12xf32> to vector<1x1x8xf32>
    %45 = arith.addf %43, %44 : vector<1x1x8xf32>
    %cst_14 = arith.constant 2.500000e+00 : f32
    %46 = vector.broadcast %cst_14 : f32 to vector<1x1x8xf32>
    %47 = arith.cmpf ogt, %45, %46 : vector<1x1x8xf32>
    %48 = arith.extui %47 : vector<1x1x8xi1> to vector<1x1x8xi32>
    %49 = arith.sitofp %48 : vector<1x1x8xi32> to vector<1x1x8xf32>
    %50 = vector.extract_strided_slice %49 {offsets = [0, 0, 2], sizes = [1, 1, 1], strides = [1, 1, 1]} : vector<1x1x8xf32> to vector<1x1x1xf32>
    %51 = vector.extract_strided_slice %49 {offsets = [0, 0, 1], sizes = [1, 1, 1], strides = [1, 1, 1]} : vector<1x1x8xf32> to vector<1x1x1xf32>
    %52 = tpu.concatenate %50, %51 in 2 : vector<1x1x1xf32>, vector<1x1x1xf32> -> vector<1x1x2xf32>
    %53 = vector.extract_strided_slice %49 {offsets = [0, 0, 6], sizes = [1, 1, 1], strides = [1, 1, 1]} : vector<1x1x8xf32> to vector<1x1x1xf32>
    %54 = vector.extract_strided_slice %49 {offsets = [0, 0, 5], sizes = [1, 1, 1], strides = [1, 1, 1]} : vector<1x1x8xf32> to vector<1x1x1xf32>
    %55 = tpu.concatenate %53, %54 in 2 : vector<1x1x1xf32>, vector<1x1x1xf32> -> vector<1x1x2xf32>
    %56 = tpu.concatenate %52, %49, %55 in 2 : vector<1x1x2xf32>, vector<1x1x8xf32>, vector<1x1x2xf32> -> vector<1x1x12xf32>
    %57 = vector.extract_strided_slice %56 {offsets = [0, 0, 0], sizes = [1, 1, 8], strides = [1, 1, 1]} : vector<1x1x12xf32> to vector<1x1x8xf32>
    %58 = vector.extract_strided_slice %56 {offsets = [0, 0, 1], sizes = [1, 1, 8], strides = [1, 1, 1]} : vector<1x1x12xf32> to vector<1x1x8xf32>
    %59 = arith.addf %57, %58 : vector<1x1x8xf32>
    %60 = vector.extract_strided_slice %56 {offsets = [0, 0, 2], sizes = [1, 1, 8], strides = [1, 1, 1]} : vector<1x1x12xf32> to vector<1x1x8xf32>
    %61 = arith.addf %59, %60 : vector<1x1x8xf32>
    %62 = vector.extract_strided_slice %56 {offsets = [0, 0, 3], sizes = [1, 1, 8], strides = [1, 1, 1]} : vector<1x1x12xf32> to vector<1x1x8xf32>
    %63 = arith.addf %61, %62 : vector<1x1x8xf32>
    %64 = vector.extract_strided_slice %56 {offsets = [0, 0, 4], sizes = [1, 1, 8], strides = [1, 1, 1]} : vector<1x1x12xf32> to vector<1x1x8xf32>
    %65 = arith.addf %63, %64 : vector<1x1x8xf32>
    %cst_15 = arith.constant 2.500000e+00 : f32
    %66 = vector.broadcast %cst_15 : f32 to vector<1x1x8xf32>
    %67 = arith.cmpf ogt, %65, %66 : vector<1x1x8xf32>
    %68 = arith.extui %67 : vector<1x1x8xi1> to vector<1x1x8xi32>
    %69 = arith.sitofp %68 : vector<1x1x8xi32> to vector<1x1x8xf32>
    %70 = vector.extract_strided_slice %69 {offsets = [0, 0, 2], sizes = [1, 1, 1], strides = [1, 1, 1]} : vector<1x1x8xf32> to vector<1x1x1xf32>
    %71 = vector.extract_strided_slice %69 {offsets = [0, 0, 1], sizes = [1, 1, 1], strides = [1, 1, 1]} : vector<1x1x8xf32> to vector<1x1x1xf32>
    %72 = tpu.concatenate %70, %71 in 2 : vector<1x1x1xf32>, vector<1x1x1xf32> -> vector<1x1x2xf32>
    %73 = vector.extract_strided_slice %69 {offsets = [0, 0, 6], sizes = [1, 1, 1], strides = [1, 1, 1]} : vector<1x1x8xf32> to vector<1x1x1xf32>
    %74 = vector.extract_strided_slice %69 {offsets = [0, 0, 5], sizes = [1, 1, 1], strides = [1, 1, 1]} : vector<1x1x8xf32> to vector<1x1x1xf32>
    %75 = tpu.concatenate %73, %74 in 2 : vector<1x1x1xf32>, vector<1x1x1xf32> -> vector<1x1x2xf32>
    %76 = tpu.concatenate %72, %69, %75 in 2 : vector<1x1x2xf32>, vector<1x1x8xf32>, vector<1x1x2xf32> -> vector<1x1x12xf32>
    %77 = vector.extract_strided_slice %76 {offsets = [0, 0, 0], sizes = [1, 1, 8], strides = [1, 1, 1]} : vector<1x1x12xf32> to vector<1x1x8xf32>
    %78 = vector.extract_strided_slice %76 {offsets = [0, 0, 1], sizes = [1, 1, 8], strides = [1, 1, 1]} : vector<1x1x12xf32> to vector<1x1x8xf32>
    %79 = arith.addf %77, %78 : vector<1x1x8xf32>
    %80 = vector.extract_strided_slice %76 {offsets = [0, 0, 2], sizes = [1, 1, 8], strides = [1, 1, 1]} : vector<1x1x12xf32> to vector<1x1x8xf32>
    %81 = arith.addf %79, %80 : vector<1x1x8xf32>
    %82 = vector.extract_strided_slice %76 {offsets = [0, 0, 3], sizes = [1, 1, 8], strides = [1, 1, 1]} : vector<1x1x12xf32> to vector<1x1x8xf32>
    %83 = arith.addf %81, %82 : vector<1x1x8xf32>
    %84 = vector.extract_strided_slice %76 {offsets = [0, 0, 4], sizes = [1, 1, 8], strides = [1, 1, 1]} : vector<1x1x12xf32> to vector<1x1x8xf32>
    %85 = arith.addf %83, %84 : vector<1x1x8xf32>
    %cst_16 = arith.constant 2.500000e+00 : f32
    %86 = vector.broadcast %cst_16 : f32 to vector<1x1x8xf32>
    %87 = arith.cmpf ogt, %85, %86 : vector<1x1x8xf32>
    %88 = arith.extui %87 : vector<1x1x8xi1> to vector<1x1x8xi32>
    %89 = arith.sitofp %88 : vector<1x1x8xi32> to vector<1x1x8xf32>
    %c0_17 = arith.constant 0 : index
    %c0_18 = arith.constant 0 : index
    %c0_19 = arith.constant 0 : index
    %90 = vector.load %arg6[%c0_17, %c0_18, %c0_19] : memref<1x1x8xf32, #tpu.memory_space<vmem>>, vector<1x1x8xf32>
    tpu.vector_store %arg6[%c0_17, %c0_18, %c0_19], %89 {strides = array<i32>} : memref<1x1x8xf32, #tpu.memory_space<vmem>>, vector<1x1x8xf32>,
    return
  }
  func.func @transform_0(%arg0: i32) -> (i32, i32, i32) {
    %c0_i32 = arith.constant 0 : i32
    %c0_i32_0 = arith.constant 0 : i32
    %c0_i32_1 = arith.constant 0 : i32
    return %arg0, %c0_i32, %c0_i32_0 : i32, i32, i32
  }
  func.func @transform_1(%arg0: i32) -> (i32, i32, i32) {
    %c0_i32 = arith.constant 0 : i32
    %c0_i32_0 = arith.constant 0 : i32
    %c0_i32_1 = arith.constant 0 : i32
    return %arg0, %c0_i32, %c0_i32_0 : i32, i32, i32
  }
  func.func @transform_2(%arg0: i32) -> (i32, i32) {
    %c0_i32 = arith.constant 0 : i32
    %c0_i32_0 = arith.constant 0 : i32
    %c0_i32_1 = arith.constant 0 : i32
    return %c0_i32, %c0_i32_0 : i32, i32
  }
  func.func @transform_3(%arg0: i32) -> (i32, i32) {
    %c0_i32 = arith.constant 0 : i32
    %c0_i32_0 = arith.constant 0 : i32
    %c0_i32_1 = arith.constant 0 : i32
    return %c0_i32, %c0_i32_0 : i32, i32
  }
  func.func @transform_4(%arg0: i32) -> (i32, i32, i32) {
    %c0_i32 = arith.constant 0 : i32
    %c0_i32_0 = arith.constant 0 : i32
    %c0_i32_1 = arith.constant 0 : i32
    return %arg0, %c0_i32, %c0_i32_0 : i32, i32, i32
  }
  func.func @transform_5(%arg0: i32) -> (i32, i32, i32) {
    %c0_i32 = arith.constant 0 : i32
    %c0_i32_0 = arith.constant 0 : i32
    %c0_i32_1 = arith.constant 0 : i32
    return %arg0, %c0_i32, %c0_i32_0 : i32, i32, i32
  }
}

</mosaic_0001>

<bundles_post_ra>
// kernel: tpu_custom_call.1
= control target key start
LH: loop header
LB: loop body
LE: loop exit
PB: predicated region body
PF: predicated region fallthrough
CT: control target
= control target key end

     0   :  { %11 = vsyncpa [#allocation3], 0  ;;  %s1475_s0 = inlined_call_operand.vmem [shape: bf16[2,512,8], index: 0, kind: input, shape index: {}]   ;;  %s1476_s1 = inlined_call_operand.vmem [shape: f32[2,1,8], index: 1, kind: input, shape index: {}]   ;;  %s1477_s2 = inlined_call_operand.vmem [shape: bf16[2,512], index: 2, kind: input, shape index: {}]   ;;  %s1478_s3 = inlined_call_operand.vmem [shape: f32[2,1], index: 3, kind: input, shape index: {}]   ;;  %s1479_s4 = inlined_call_operand.hbm [shape: f32[2,2,8], index: 4, kind: output, shape index: {0}]   ;;  %s1480_s5 = inlined_call_operand.hbm [shape: f32[2,1,8], index: 5, kind: output, shape index: {1}]  }
   0x1   :  { %13 = vsyncpa [#allocation3 + $0x1], 0 }
   0x2   :  { %14 = vsyncpa [#allocation5], 0 }
   0x3   :  { %16 = vsyncpa [#allocation5 + $0x1], 0  ;;  %s1237_s18 = smov 0   ;;  %s1239_s19 = smov 0  }
   0x4   :  { %s1241_s20 = smov 0   ;;  %s1243_s21 = smov 0  }
   0x5 LB: > { %s1258_s22 = sadd.s32 4294967295, %s1193_s21   ;;  %s913_s23 = sadd.s32 4294967294, %s1193_s21   ;;  %s1193_s21 = sphi %s1243_s21, %s1486_s21   ;;  %s1189_s20 = sphi %s1241_s20, %s1485_s20   ;;  %s1185_s19 = sphi %s1239_s19, %s1484_s19   ;;  %s1181_s18 = sphi %s1237_s18, %s1483_s18  }
   0x6   : > { %s1262_s24 = sadd.s32 1, %s1193_s21   ;;  %s123_s25 = sadd.s32 1, %s1189_s20 }
   0x7   : > { %s120_s26 = ssub.s32 %s1193_s21, %s1262_s24  ;;  %p133_p0 = scmp.ne.s32.totalorder %s1189_s20, %s1185_s19 }
   0x8   : > { %p121_p1 = scmp.eq.s32.totalorder %s120_s26, 0  ;;  %p134_p2 = scmp.eq.s32.totalorder %s1258_s22, 1 }
   0x9   : > { %p139_p3 = scmp.ne.s32.totalorder %s1185_s19, %s1181_s18  ;;  %p140_p4 = scmp.eq.s32.totalorder %s913_s23, 1 }
   0xa   : > { %s1273_s27 = scalar_select %p121_p1, %s1189_s20, %s123_s25  }
   0xb   : > { %p1275_p5 = por %p134_p2, %p133_p0  ;;  %p1279_p6 = por %p140_p4, %p139_p3 }
   0xc   : > { %p916_p7 = scmp.ge.s32.totalorder %s1193_s21, 1  ;;  %p204_p8 = scmp.lt.s32.totalorder %s1193_s21, 3 }
   0xe   : > { %p205_p9 = pnand %p916_p7, %p204_p8 }
   0xf   : > { %p239_p10 = scmp.lt.s32.totalorder (!%p205_p9), %s1258_s22, 1  ;;  %v1289_v0 = vld.sshfl [vmem:[%s1477_s2] sm:$0x33 pattern:$0x75316420] (!%p205_p9)  ;;  %v331_v1 = vlaneseq (!%p205_p9)  ;;  %v1195_v2 = vmov (!%p205_p9), 0  }
  0x10   : > { %208 = sbr.rel (%p205_p9) target bundleno = 1387 (0x56b), region = 36  ;;  %1062 = vset.pattern.permute.xlu0 (!%p205_p9), %v1195_v2  ;;  %v313_v3 = vld [vmem:[%s1478_s3] sm:$0x3] (!%p205_p9)  ;;  %v1196_v4 = vmov (!%p205_p9), 1966171168   ;;  %v327_v7 = vcombine.high (!%p205_p9), %v1289_v0, %v1289_v0  ;;  %s1198_s17 = smov (!%p205_p9), 124  }
  0x11   : > { %v329_v5 = vunpack.c.l.s4 (!%p205_p9), %v1196_v4  ;;  %v1297_v6 = vshrl.u32 (!%p205_p9), %v331_v1, 7  ;;  %316 = vperm.xlu0 (!%p205_p9), %1062, %v313_v3   ;;  %s1199_s23 = smov (!%p205_p9), 122   ;;  %s1200_s25 = smov (!%p205_p9), 126   ;;  %vm642_vm1 = vcmask (!%p205_p9), 58368   ;;  %vm662_vm2 = vcmask (!%p205_p9), 7168  }
  0x12   : > { %s1201_s26 = smov (!%p205_p9), 2   ;;  %s1352_s30 = sand.u32 (!%p205_p9), 1, %s1185_s19   ;;  %vm678_vm3 = vcmask (!%p205_p9), 15360   ;;  %vm680_vm4 = vcmask (!%p205_p9), 80896  }
  0x13   : > { %v330_v8 = vunpack.c.0.s8 (!%p205_p9), %v329_v5  ;;  %v627_v60 = vsub.s32 (!%p205_p9), 0, %v1297_v6  ;;  %v1197_v5 = vmov (!%p205_p9), 0.0   ;;  %s917_s6 = sshll.u32 (!%p205_p9), %s1352_s30, 1  ;;  %s1202_s8 = smov (!%p205_p9), 10  }
  0x14   : > { %s1355_s7 = scalar_lea.vmem (!%p205_p9), [#allocation2], %s917_s6  ;;  %s959_s11 = sshll.u32 (!%p205_p9), %s1258_s22, 5 }
  0x15   : > { %v333_v10 = vsub.s32 (!%p205_p9), %v330_v8, %v1297_v6  ;;  %s1393_s14 = scalar_lea.hbm (!%p205_p9), %s1479_s4, %s959_s11  ;;  %s804_s15 = sshll.u32 (!%p205_p9), %s1355_s7, 4  ;;  %s1397_s15 = int_to_ptr.vmem [resolvable:$true] %s804_s15 }
  0x17   : > { %s1295_s9 = scalar_select %p239_p10, %s1258_s22, 1  ;;  %v341_v13 = vrot.slane %v327_v7, %v333_v10  ;;  %v334_v41 = vrot.slane %v1289_v0, %v333_v10 }
  0x19   : > { %s963_s10 = sshll.u32 %s1295_s9, 8  ;;  %572 = vmatprep.mubr.bf16.mxu0 %v341_v13  ;;  %v343_v16 = vcombine.high %v341_v13, %v341_v13  ;;  %v342_v45 = vcombine.high %v334_v41, %v334_v41  ;;  %s246_s16 = scalar_lea.vmem %s1476_s1, %s1295_s9 }
  0x1a   : > { %s1305_s13 = scalar_lea.vmem %s1475_s0, %s963_s10  ;;  %v953_v63 = vld [vmem:[%s246_s16] ss:$0 sm:$0xff]  ;;  %s1203_s9 = smov 127  }
  0x1b   : > { %v1063_v9 = vld [vmem:[%s1305_s13 + $0x40] sm:$0xff]   ;;  %v1067_v15 = vld [vmem:[%s1305_s13 + $0x48] sm:$0xff]   ;;  %612 = vmatprep.mubr.bf16.mxu1 %v343_v16  ;;  %v1071_v20 = vld [vmem:[%s1305_s13 + $0x50] sm:$0xff]   ;;  %s1204_s10 = smov 125   ;;  %s787_s16 = scalar_lea.sflag [#allocation3], %s1352_s30 }
  0x1c   : > { %v1064_v11 = vld [vmem:[%s1305_s13 + $0xc0] sm:$0xff]   ;;  %964 = vmatprep.subr.bf16.mxu0 %v1063_v9  ;;  %v1068_v17 = vld [vmem:[%s1305_s13 + $0xc8] sm:$0xff]   ;;  %v1072_v21 = vld [vmem:[%s1305_s13 + $0xd0] sm:$0xff]  }
  0x1d   : > { %v1065_v12 = vld [vmem:[%s1305_s13] sm:$0xff]   ;;  %986 = vmatprep.subr.bf16.mxu1 %v1064_v11  ;;  %v1069_v18 = vld [vmem:[%s1305_s13 + $0x8] sm:$0xff]   ;;  %v1073_v22 = vld [vmem:[%s1305_s13 + $0x10] sm:$0xff]  }
  0x1e   : > { %v1066_v14 = vld [vmem:[%s1305_s13 + $0x80] sm:$0xff]   ;;  %965 = vmatpush3.bf16.msra.mxu0 %v1065_v12  ;;  %v1070_v19 = vld [vmem:[%s1305_s13 + $0x88] sm:$0xff]   ;;  %v1074_v23 = vld [vmem:[%s1305_s13 + $0x90] sm:$0xff]  }
  0x1f   : > { %987 = vmatpush3.bf16.msra.mxu1 %v1066_v14  ;;  %966 = vmatprep.subr.bf16.mxu0 %v1067_v15  ;;  %v1075_v24 = vld [vmem:[%s1305_s13 + $0x58] sm:$0xff]   ;;  %v1079_v28 = vld [vmem:[%s1305_s13 + $0x60] sm:$0xff]   ;;  %v1083_v32 = vld [vmem:[%s1305_s13 + $0x68] sm:$0xff]  }
  0x20   : > { %988 = vmatprep.subr.bf16.mxu1 %v1068_v17  ;;  %v1076_v25 = vld [vmem:[%s1305_s13 + $0xd8] sm:$0xff]   ;;  %v1080_v29 = vld [vmem:[%s1305_s13 + $0xe0] sm:$0xff]   ;;  %v1084_v33 = vld [vmem:[%s1305_s13 + $0xe8] sm:$0xff]  }
  0x21   : > { %v1077_v26 = vld [vmem:[%s1305_s13 + $0x18] sm:$0xff]   ;;  %v1081_v30 = vld [vmem:[%s1305_s13 + $0x20] sm:$0xff]   ;;  %v1085_v34 = vld [vmem:[%s1305_s13 + $0x28] sm:$0xff]  }
  0x22   : > { %967 = vmatpush3.bf16.msra.mxu0 %v1069_v18  ;;  %v1078_v27 = vld [vmem:[%s1305_s13 + $0x98] sm:$0xff]   ;;  %v1082_v31 = vld [vmem:[%s1305_s13 + $0xa0] sm:$0xff]   ;;  %v1086_v35 = vld [vmem:[%s1305_s13 + $0xa8] sm:$0xff]  }
  0x23   : > { %989 = vmatpush3.bf16.msra.mxu1 %v1070_v19  ;;  %968 = vmatprep.subr.bf16.mxu0 %v1071_v20  ;;  %v1087_v36 = vld [vmem:[%s1305_s13 + $0x70] sm:$0xff]   ;;  %v1091_v40 = vld [vmem:[%s1305_s13 + $0x78] sm:$0xff]  }
  0x24   : > { %990 = vmatprep.subr.bf16.mxu1 %v1072_v21  ;;  %v1088_v37 = vld [vmem:[%s1305_s13 + $0xf0] sm:$0xff]   ;;  %v1092_v42 = vld [vmem:[%s1305_s13 + $0xf8] sm:$0xff]  }
  0x25   : > { %v1089_v38 = vld [vmem:[%s1305_s13 + $0x30] sm:$0xff]   ;;  %v1093_v43 = vld [vmem:[%s1305_s13 + $0x38] sm:$0xff]  }
  0x26   : > { %969 = vmatpush3.bf16.msra.mxu0 %v1073_v22  ;;  %v1090_v39 = vld [vmem:[%s1305_s13 + $0xb0] sm:$0xff]   ;;  %v1094_v44 = vld [vmem:[%s1305_s13 + $0xb8] sm:$0xff]  }
  0x27   : > { %991 = vmatpush3.bf16.msra.mxu1 %v1074_v23  ;;  %970 = vmatprep.subr.bf16.mxu0 %v1075_v24 }
  0x28   : > { %992 = vmatprep.subr.bf16.mxu1 %v1076_v25 }
  0x2a   : > { %971 = vmatpush3.bf16.msra.mxu0 %v1077_v26 }
  0x2b   : > { %993 = vmatpush3.bf16.msra.mxu1 %v1078_v27  ;;  %972 = vmatprep.subr.bf16.mxu0 %v1079_v28 }
  0x2c   : > { %994 = vmatprep.subr.bf16.mxu1 %v1080_v29 }
  0x2e   : > { %973 = vmatpush3.bf16.msra.mxu0 %v1081_v30 }
  0x2f   : > { %995 = vmatpush3.bf16.msra.mxu1 %v1082_v31  ;;  %974 = vmatprep.subr.bf16.mxu0 %v1083_v32 }
  0x30   : > { %996 = vmatprep.subr.bf16.mxu1 %v1084_v33 }
  0x32   : > { %975 = vmatpush3.bf16.msra.mxu0 %v1085_v34 }
  0x33   : > { %997 = vmatpush3.bf16.msra.mxu1 %v1086_v35  ;;  %976 = vmatprep.subr.bf16.mxu0 %v1087_v36 }
  0x34   : > { %998 = vmatprep.subr.bf16.mxu1 %v1088_v37 }
  0x36   : > { %977 = vmatpush3.bf16.msra.mxu0 %v1089_v38 }
  0x37   : > { %999 = vmatpush3.bf16.msra.mxu1 %v1090_v39  ;;  %978 = vmatprep.subr.bf16.mxu0 %v1091_v40 }
  0x38   : > { %1000 = vmatprep.subr.bf16.mxu1 %v1092_v42 }
  0x3a   : > { %979 = vmatpush3.bf16.msra.mxu0 %v1093_v43 }
  0x3b   : > { %1001 = vmatpush3.bf16.msra.mxu1 %v1094_v44 }
  0x3d   : > { %573 = vmatmul.mubr.bf16.vlgmr.msra.gmra.mrb[0].mxu0 %v334_v41 }
  0x3e   : > { %613 = vmatmul.mubr.bf16.vlgmr.msra.gmra.mrb[0].mxu1 %v342_v45 }
  0x90   : > { %v317_v47 = vpop.permute.xlu0 %316 }
 0x110   : > { %v980_v46 = vpop.f32.mrb[0].mxu0 }
 0x111   : > { %v1002_v48 = vpop.f32.mrb[0].mxu1  ;;  %v981_v49 = vpop.f32.mrb[1].mxu0 }
 0x112   : > { %v982_v50 = vadd.f32 %v981_v49, %v980_v46  ;;  %v1003_v51 = vpop.f32.mrb[1].mxu1  ;;  %v983_v52 = vpop.f32.mrb[2].mxu0 }
 0x113   : > { %v1004_v53 = vadd.f32 %v1003_v51, %v1002_v48  ;;  %v1005_v54 = vpop.f32.mrb[2].mxu1  ;;  %v984_v55 = vpop.f32.mrb[3].mxu0 }
 0x114   : > { %v575_v56 = vadd.f32 %v982_v50, %v317_v47  ;;  %v1006_v57 = vpop.f32.mrb[3].mxu1 }
 0x116   : > { %v615_v58 = vadd.f32 %v1004_v53, %v575_v56 }
 0x118   : > { %v620_v59 = vmul.f32 0.1, %v615_v58 }
 0x11a   : > { %v622_v61 = vrot.slane %v620_v59, 1  ;;  %v644_v62 = vrot.slane %v620_v59, 7 }
 0x11c   : > { %v624_v0 = vmax.f32 %v620_v59, %v622_v61  ;;  %v646_v1 = vsub.f32 %v620_v59, %v644_v62 }
 0x11e   : > { %v628_v2 = vrot.slane %v624_v0, %v627_v60  ;;  %v654_v3 = vadd.f32 %v953_v63, %v646_v1 }
 0x120   : > { %v629_v4 = vsub.f32 %v620_v59, %v628_v2  ;;  %vm655_vm0 = vcmp.gt.f32.partialorder %v654_v3, 0.0 }
 0x121   : > { %v954_v7 = vsel %vm655_vm0, 1.0, %v1197_v5 }
 0x122   : > { %v630_v8 = vmul.f32 1.442695, %v629_v4  ;;  %667 = vrot.lane.b32.xlu1 %v954_v7, %s1198_s17  ;;  %664 = vrot.lane.b32.xlu0 %v954_v7, %s1199_s23 }
 0x124   : > { %1095 = vpow2.f32 %v630_v8 }
 0x126   : > { %659 = vrot.lane.b32.xlu1 %v954_v7, %s1200_s25  ;;  %671 = vrot.lane.b32.xlu0 %v954_v7, %s1201_s26 }
 0x12e   : > { %v1096_v6 = vpop.eup %1095 }
 0x12f   : > { %v633_v9 = vrot.slane %v1096_v6, 1 }
 0x131   : > { %v635_v10 = vadd.f32 %v1096_v6, %v633_v9 }
 0x133   : > { %1097 = vrcp.f32 %v635_v10 }
 0x13d   : > { %v1098_v11 = vpop.eup %1097 }
 0x13e   : > { %v640_v12 = vrot.slane %v1098_v11, %v627_v60 }
 0x140   : > { %v641_v13 = vmul.f32 %v1096_v6, %v640_v12 }
 0x142   : > { %643 = vst.msk [vmem:[%s1355_s7] sm:$0x3] %vm642_vm1, %v641_v13 }
 0x194   : > { %v668_v14 = vpop.permute.xlu1 %667  ;;  %v665_v15 = vpop.permute.xlu0 %664 }
 0x195   : > { %v670_v16 = vsel %vm662_vm2, %v665_v15, %v668_v14 }
 0x196   : > { %675 = vrot.lane.b32.xlu1 %v670_v16, %s1202_s8 }
 0x198   : > { %v660_v17 = vpop.permute.xlu1 %659  ;;  %v672_v19 = vpop.permute.xlu0 %671 }
 0x199   : > { %v663_v18 = vsel %vm662_vm2, %v660_v17, %v954_v7 }
 0x19a   : > { %v679_v20 = vsel %vm678_vm3, %v663_v18, %v672_v19 }
 0x208   : > { %v676_v21 = vpop.permute.xlu1 %675 }
 0x209   : > { %v681_v22 = vsel %vm680_vm4, %v679_v20, %v676_v21 }
 0x20a   : > { %687 = vrot.lane.b32.xlu1 %v681_v22, %s1200_s25  ;;  %683 = vrot.lane.b32.xlu0 %v681_v22, %s1203_s9 }
 0x20e   : > { %695 = vrot.lane.b32.xlu1 %v681_v22, %s1198_s17  ;;  %691 = vrot.lane.b32.xlu0 %v681_v22, %s1204_s10 }
 0x27c   : > { %v688_v23 = vpop.permute.xlu1 %687  ;;  %v684_v24 = vpop.permute.xlu0 %683 }
 0x27d   : > { %v686_v25 = vadd.f32 %v684_v24, %v681_v22 }
 0x27f   : > { %v690_v26 = vadd.f32 %v688_v23, %v686_v25 }
 0x280   : > { %v692_v27 = vpop.permute.xlu0 %691  ;;  %v696_v29 = vpop.permute.xlu1 %695 }
 0x281   : > { %v694_v28 = vadd.f32 %v692_v27, %v690_v26 }
 0x283   : > { %v698_v30 = vadd.f32 %v696_v29, %v694_v28 }
 0x285   : > { %vm699_vm5 = vcmp.gt.f32.partialorder %v698_v30, 2.5 }
 0x286   : > { %v955_v31 = vsel %vm699_vm5, 1.0, %v1197_v5 }
 0x287   : > { %710 = vrot.lane.b32.xlu1 %v955_v31, %s1198_s17  ;;  %707 = vrot.lane.b32.xlu0 %v955_v31, %s1199_s23 }
 0x28b   : > { %714 = vrot.lane.b32.xlu1 %v955_v31, %s1201_s26  ;;  %703 = vrot.lane.b32.xlu0 %v955_v31, %s1200_s25 }
 0x2f9   : > { %v711_v32 = vpop.permute.xlu1 %710  ;;  %v708_v33 = vpop.permute.xlu0 %707 }
 0x2fa   : > { %v713_v34 = vsel %vm662_vm2, %v708_v33, %v711_v32 }
 0x2fb   : > { %718 = vrot.lane.b32.xlu0 %v713_v34, %s1202_s8 }
 0x2fd   : > { %v704_v35 = vpop.permute.xlu0 %703  ;;  %v715_v36 = vpop.permute.xlu1 %714 }
 0x2fe   : > { %v706_v37 = vsel %vm662_vm2, %v704_v35, %v955_v31 }
 0x2ff   : > { %v721_v38 = vsel %vm678_vm3, %v706_v37, %v715_v36 }
 0x36d   : > { %v719_v39 = vpop.permute.xlu0 %718 }
 0x36e   : > { %v722_v40 = vsel %vm680_vm4, %v721_v38, %v719_v39 }
 0x36f   : > { %728 = vrot.lane.b32.xlu0 %v722_v40, %s1200_s25  ;;  %724 = vrot.lane.b32.xlu1 %v722_v40, %s1203_s9 }
 0x373   : > { %736 = vrot.lane.b32.xlu0 %v722_v40, %s1198_s17  ;;  %732 = vrot.lane.b32.xlu1 %v722_v40, %s1204_s10 }
 0x3e1   : > { %v729_v41 = vpop.permute.xlu0 %728  ;;  %v725_v42 = vpop.permute.xlu1 %724 }
 0x3e2   : > { %v727_v43 = vadd.f32 %v725_v42, %v722_v40 }
 0x3e4   : > { %v731_v44 = vadd.f32 %v729_v41, %v727_v43 }
 0x3e5   : > { %v733_v45 = vpop.permute.xlu1 %732  ;;  %v737_v47 = vpop.permute.xlu0 %736 }
 0x3e6   : > { %v735_v46 = vadd.f32 %v733_v45, %v731_v44 }
 0x3e8   : > { %v739_v48 = vadd.f32 %v737_v47, %v735_v46 }
 0x3ea   : > { %vm740_vm6 = vcmp.gt.f32.partialorder %v739_v48, 2.5 }
 0x3eb   : > { %v956_v49 = vsel %vm740_vm6, 1.0, %v1197_v5 }
 0x3ec   : > { %751 = vrot.lane.b32.xlu0 %v956_v49, %s1198_s17  ;;  %748 = vrot.lane.b32.xlu1 %v956_v49, %s1199_s23  ;;  %s1099_s23 = scalar_lea.vmem %s1397_s15, 32 }
 0x3ed   : > { %p1100_p11 = scmp.ne.s32.totalorder %s1397_s15, %s1099_s23 }
 0x3ef   : > { %p1101_p12 = pnand %p1100_p11, %p1275_p5 }
 0x3f0   : > { %755 = vrot.lane.b32.xlu0 %v956_v49, %s1201_s26  ;;  %744 = vrot.lane.b32.xlu1 %v956_v49, %s1200_s25  ;;  %s1205_s26 = smov [#allocation2]  }
 0x3f1   : > { %p1102_p13 = pneg %p1101_p12  ;;  %s1103_s6 = sshll.u32 %s1205_s26, 4  ;;  %s1104_s6 = int_to_ptr.vmem [resolvable:$false] %s1103_s6 }
 0x3f2   : > { %s1105_s7 = scalar_lea.vmem %s1104_s6, 64  ;;  %p1106_p0 = scmp.lt.s32.totalorder %s1397_s15, %s1104_s6 }
 0x3f3   : > { %p1107_p1 = scmp.lt.s32.totalorder %s1105_s7, %s1099_s23 }
 0x3f5   : > { %p1108_p2 = por %p1107_p1, %p1106_p0 }
 0x3f7   : > { %p1109_p3 = pnand %p1108_p2, %p1102_p13 }
 0x45e   : > { %v752_v50 = vpop.permute.xlu0 %751  ;;  %v749_v51 = vpop.permute.xlu1 %748 }
 0x45f   : > { %v754_v52 = vsel %vm662_vm2, %v749_v51, %v752_v50 }
 0x460   : > { %759 = vrot.lane.b32.xlu1 %v754_v52, %s1202_s8 }
 0x462   : > { %v745_v53 = vpop.permute.xlu1 %744  ;;  %v756_v54 = vpop.permute.xlu0 %755 }
 0x463   : > { %v747_v55 = vsel %vm662_vm2, %v745_v53, %v956_v49 }
 0x464   : > { %v762_v56 = vsel %vm678_vm3, %v747_v55, %v756_v54 }
 0x4d2   : > { %v760_v57 = vpop.permute.xlu1 %759 }
 0x4d3   : > { %v763_v58 = vsel %vm680_vm4, %v762_v56, %v760_v57 }
 0x4d4   : > { %1112 = shalt.err (!%p1109_p3)
}
 0x4d5   : > { %s1113_s8 = scalar_lea.hbm %s1393_s14, 32  ;;  %s1117_s13 = scalar_lea.hbm %s1479_s4, 64 }
 0x4d6   : > { %p1114_p4 = scmp.ne.s32.totalorder %s1393_s14, %s1113_s8  ;;  %p1118_p9 = scmp.lt.u32.totalorder %s1393_s14, %s1479_s4 }
 0x4d7   : > { %p1119_p10 = scmp.lt.u32.totalorder %s1117_s13, %s1113_s8  ;;  %p1121_p12 = scmp.lt.u32.totalorder %s1113_s8, %s1393_s14 }
 0x4d8   : > { %p1115_p7 = pnand %p1114_p4, %p1275_p5 }
 0x4d9   : > { %p1120_p11 = por %p1119_p10, %p1118_p9 }
 0x4da   : > { %p1116_p8 = pneg %p1115_p7 }
 0x4db   : > { %p1122_p13 = por %p1121_p12, %p1120_p11 }
 0x4dd   : > { %p1123_p0 = pnand %p1122_p13, %p1116_p8 }
 0x4df   : > { %1126 = shalt.err (!%p1123_p0)
}
 0x4e0   : > { %1008 = dma.vmem_to_hbm [thread:$0]  (%p1275_p5), %s1397_s15, 32, %s1393_s14, %s787_s16   ;;  %769 = vrot.lane.b32.xlu1 %v763_v58, %s1200_s25  ;;  %765 = vrot.lane.b32.xlu0 %v763_v58, %s1203_s9  ;;  %vm784_vm7 = vcmask 58369  }
 0x4e1   : > { %s960_s23 = sshll.u32 %s1258_s22, 4  ;;  %s238_s7 = scalar_lea.vmem [#allocation4], %s1352_s30 }
 0x4e2   : > { %s817_s14 = sshll.u32 %s238_s7, 4  ;;  %s1206_s15 = smov [#allocation4]   ;;  %s1433_s14 = int_to_ptr.vmem [resolvable:$true] %s817_s14 }
 0x4e3   : > { %s1127_s22 = scalar_lea.vmem %s1433_s14, 16  ;;  %s1131_s16 = sshll.u32 %s1206_s15, 4  ;;  %s1132_s16 = int_to_ptr.vmem [resolvable:$false] %s1131_s16 }
 0x4e4   : > { %777 = vrot.lane.b32.xlu1 %v763_v58, %s1198_s17  ;;  %773 = vrot.lane.b32.xlu0 %v763_v58, %s1204_s10  ;;  %s1431_s17 = scalar_lea.hbm %s1480_s5, %s960_s23  ;;  %s792_s10 = scalar_lea.sflag [#allocation5], %s1352_s30 }
 0x4e5   : > { %p1128_p1 = scmp.ne.s32.totalorder %s1433_s14, %s1127_s22  ;;  %s1133_s8 = scalar_lea.vmem %s1132_s16, 32 }
 0x4e6   : > { %p1134_p4 = scmp.lt.s32.totalorder %s1433_s14, %s1132_s16  ;;  %p1135_p7 = scmp.lt.s32.totalorder %s1133_s8, %s1127_s22 }
 0x4e7   : > { %p1129_p2 = pnand %p1128_p1, %p1275_p5 }
 0x4e8   : > { %p1136_p8 = por %p1135_p7, %p1134_p4 }
 0x4e9   : > { %p1130_p3 = pneg %p1129_p2 }
 0x4eb   : > { %p1137_p9 = pnand %p1136_p8, %p1130_p3 }
 0x552   : > { %v770_v59 = vpop.permute.xlu1 %769  ;;  %v766_v60 = vpop.permute.xlu0 %765 }
 0x553   : > { %v768_v61 = vadd.f32 %v766_v60, %v763_v58 }
 0x555   : > { %v772_v62 = vadd.f32 %v770_v59, %v768_v61 }
 0x556   : > { %v774_v63 = vpop.permute.xlu0 %773  ;;  %v778_v1 = vpop.permute.xlu1 %777 }
 0x557   : > { %v776_v0 = vadd.f32 %v774_v63, %v772_v62 }
 0x559   : > { %v780_v2 = vadd.f32 %v778_v1, %v776_v0 }
 0x55b   : > { %vm781_vm8 = vcmp.gt.f32.partialorder %v780_v2, 2.5 }
 0x55c   : > { %v957_v3 = vsel %vm781_vm8, 1.0, %v1197_v5 }
 0x55d   : > { %785 = vst.msk [vmem:[%s238_s7 - $0x1] sm:$0x2] %vm784_vm7, %v957_v3 }
 0x55e   : > { %1140 = shalt.err (!%p1137_p9)
}
 0x55f   : > { %s1141_s30 = scalar_lea.hbm %s1431_s17, 16  ;;  %s1145_s13 = scalar_lea.hbm %s1480_s5, 32 }
 0x560   : > { %p1142_p10 = scmp.ne.s32.totalorder %s1431_s17, %s1141_s30  ;;  %p1146_p13 = scmp.lt.u32.totalorder %s1431_s17, %s1480_s5 }
 0x561   : > { %p1147_p0 = scmp.lt.u32.totalorder %s1145_s13, %s1141_s30  ;;  %p1149_p2 = scmp.lt.u32.totalorder %s1141_s30, %s1431_s17 }
 0x562   : > { %p1143_p11 = pnand %p1142_p10, %p1275_p5 }
 0x563   : > { %p1148_p1 = por %p1147_p0, %p1146_p13 }
 0x564   : > { %p1144_p12 = pneg %p1143_p11 }
 0x565   : > { %p1150_p3 = por %p1149_p2, %p1148_p1 }
 0x567   : > { %p1151_p4 = pnand %p1150_p3, %p1144_p12 }
 0x569   : > { %1154 = shalt.err (!%p1151_p4)
}
 0x56a   : > { %1009 = dma.vmem_to_hbm [thread:$0]  (%p1275_p5), %s1433_s14, 16, %s1431_s17, %s792_s10  }
 0x56b PF: > { %p1019_p7 = scmp.ge.s32.totalorder %s1193_s21, 2  ;;  %s829_s23 = sand.u32 1, %s1181_s18  }
 0x56c   : > { %s830_s7 = scalar_lea.sflag [#allocation3], %s829_s23 }
 0x56d   : > { %p1013_p8 = pnand %p1019_p7, %p1279_p6 }
 0x56f   : > { %1172 = dma.done.wait (!%p1013_p8), %s830_s7, 32  }
 0x570   : > { %1174 = vsyncadd (!%p1013_p8), %s830_s7, 4294967264  ;;  %s839_s25 = scalar_lea.sflag [#allocation5], %s829_s23 }
 0x571   : > { %1176 = dma.done.wait (!%p1013_p8), %s839_s25, 16  }
 0x572   : > { %1178 = vsyncadd (!%p1013_p8), %s839_s25, 4294967280  ;;  %p19_p5 = scmp.ge.s32.totalorder %s1262_s24, 4   ;;  %s1483_s18 = smov %s1185_s19 }
 0x573   : > { %s1484_s19 = smov %s1189_s20  ;;  %s1485_s20 = smov %s1273_s27 }
 0x574   : > { %s1486_s21 = smov %s1262_s24  ;;  %21 = sbr.rel (!%p19_p5) target bundleno = 5 (0x5), region = 91 }
 0x57b   :  { %843 = vsyncpa [#allocation3], 1 }
 0x57c   :  { %845 = vsyncpa [#allocation3 + $0x1], 1 }
 0x57d   :  { %846 = vsyncpa [#allocation5], 1 }
 0x57e   :  { %848 = vsyncpa [#allocation5 + $0x1], 1 }

</bundles_post_ra>
